<compile_context>
chip_gen: v5e
topology: v5e:2x2
jax: 0.10.0
libtpu: 0.0.40
codegen_flags: <defaults>
</compile_context>

<pallas_src>
import math

import jax
import jax.numpy as jnp
from jax.experimental import pallas as pl
from jax.experimental.pallas import tpu as pltpu

_OFF = 8  # 8-aligned sublane offset of the pooled vector inside the conv scratch


def _make_kernel(*, training, k, pad, c_pad, hw_true, hw_pad):
    """Build the kernel body. All arguments are static Python values."""
    inv_hw = 1.0 / float(hw_true)

    def _gate_and_scale(taps_ref, spad_ref, src, o_ref):
        # ---- avg + max pooling over the spatial (lane) axis -> (Nb, C, 1) ----
        s_sum = jnp.sum(src, axis=-1, keepdims=True) * inv_hw
        if hw_pad != hw_true:
            lane = jax.lax.broadcasted_iota(jnp.int32, src.shape, 2)
            s_max = jnp.max(jnp.where(lane < hw_true, src, -jnp.inf),
                            axis=-1, keepdims=True)
        else:
            s_max = jnp.max(src, axis=-1, keepdims=True)
        # Conv1d is linear: conv(avg) + conv(max) == conv(avg + max).
        s = s_sum + s_max

        # ---- k-tap conv over channels as shifted FMAs (no (C,C) matmul) ------
        spad_ref[...] = jnp.zeros_like(spad_ref)       # zero borders == zero pad
        spad_ref[:, _OFF:_OFF + c_pad, :] = s          # 8-aligned sublane store
        y = taps_ref[0] * spad_ref[:, _OFF - pad:_OFF - pad + c_pad, :]
        for j in range(1, k):
            lo = _OFF - pad + j
            y = y + taps_ref[j] * spad_ref[:, lo:lo + c_pad, :]

        gate = jax.nn.sigmoid(y)                       # (Nb, C, 1)
        o_ref[...] = src * gate                        # broadcast over HW lanes

    if training:
        def kernel(taps_ref, x_ref, mask_ref, o_ref, spad_ref):
            # Stage the dropped tensor in the output buffer (no extra full-tile
            # temporary held live across the gate computation).
            o_ref[...] = x_ref[...] * mask_ref[...]
            _gate_and_scale(taps_ref, spad_ref, o_ref[...], o_ref)
    else:
        def kernel(taps_ref, x_ref, o_ref, spad_ref):
            _gate_and_scale(taps_ref, spad_ref, x_ref[...], o_ref)

    return kernel


def _choose_batch_block(n, per_elem_bytes, n_arrays):
    """Pick Nb (a divisor of n): big enough to amortize per-step overhead,
    small enough that double-buffering of all blocks fits v7x's 64 MiB VMEM."""
    target = 1 << 20                       # ~1 MiB/block amortizes step overhead
    cap = (24 << 20) // (2 * n_arrays)     # 2x buffered n_arrays blocks <= 24 MiB
    max_nb = max(1, min(n, target // per_elem_bytes, cap // per_elem_bytes))
    nb = 1
    for d in range(1, n + 1):
        if n % d == 0 and d <= max_nb:
            nb = d
    # keep >= 2 grid steps when possible so both v7x TensorCores get work
    if n >= 2 and n // nb < 2 and nb % 2 == 0:
        nb //= 2
    return nb


def drop_mlt_eca(x_nchw, conv_taps, *, p=0.1, training=False, seed=0):
    """Forward pass of Drop_MltECA.

    x_nchw:    (N, C, H, W) float32
    conv_taps: (k,) float32 -- Conv1d(1, 1, k, bias=False) weights.
    """
    N, C, H, W = map(int, x_nchw.shape)
    HW = H * W
    k = int(conv_taps.shape[0])
    pad = (k - 1) // 2
    if pad > _OFF:
        raise ValueError(f"conv kernel too wide (k={k}); expected k <= {2 * _OFF + 1}")
    if training and p >= 1.0:
        return jnp.zeros_like(x_nchw)      # nn.Dropout(p=1) zeroes everything

    # Pad to TPU-friendly shapes: channels (sublanes) to x8, spatial (lanes) to x128.
    c_pad = -(-C // 8) * 8
    hw_pad = -(-HW // 128) * 128

    x = x_nchw.reshape(N, C, HW).astype(jnp.float32)
    if c_pad != C or hw_pad != HW:
        # zero-padded channels pool to 0, exactly matching the conv's zero padding
        x = jnp.pad(x, ((0, 0), (0, c_pad - C), (0, hw_pad - HW)))

    use_mask = bool(training) and p > 0.0
    n_arrays = 3 if use_mask else 2        # (x [, mask]) + out
    per_elem_bytes = c_pad * hw_pad * 4
    nb = _choose_batch_block(N, per_elem_bytes, n_arrays)
    grid = (N // nb,)
    block_bytes = nb * per_elem_bytes
    vmem_limit = int(min(100 << 20,
                         max(16 << 20, 2 * n_arrays * block_bytes + (4 << 20))))

    kernel = _make_kernel(training=use_mask, k=k, pad=pad,
                          c_pad=c_pad, hw_true=HW, hw_pad=hw_pad)

    block_spec = pl.BlockSpec((nb, c_pad, hw_pad), lambda i: (i, 0, 0))
    in_specs = [pl.BlockSpec(memory_space=pltpu.MemorySpace.SMEM),  # conv taps
                block_spec]                                         # x
    args = [conv_taps.astype(jnp.float32), x]

    if use_mask:
        # TODO(synk): dropout mask is generated with jax.random (different RNG
        # stream than torch's nn.Dropout; same Bernoulli(1-p) / 1/(1-p) scaling).
        # Generated in the wrapper because the stateful TPU PRNG primitives are
        # not available in the CPU interpret path.
        keep = jax.random.bernoulli(jax.random.PRNGKey(int(seed)),
                                    1.0 - float(p), (N, c_pad, hw_pad))
        mask = jnp.where(keep, jnp.float32(1.0 / (1.0 - float(p))),
                         jnp.float32(0.0))
        in_specs.append(block_spec)
        args.append(mask)

    out = pl.pallas_call(
        kernel,
        out_shape=jax.ShapeDtypeStruct((N, c_pad, hw_pad), jnp.float32),
        grid_spec=pltpu.PrefetchScalarGridSpec(
            num_scalar_prefetch=0,
            grid=grid,
            in_specs=in_specs,
            out_specs=block_spec,
            scratch_shapes=[pltpu.VMEM((nb, c_pad + 2 * _OFF, 1), jnp.float32)],
        ),
        compiler_params=pltpu.CompilerParams(
            dimension_semantics=("parallel",),
            vmem_limit_bytes=vmem_limit,
        ),
    )(*args)

    return out[:, :C, :HW].reshape(N, C, H, W)


def _reference(x, taps):
    """Pure-JAX reference of the eval-mode forward (dropout = identity)."""
    N, C, H, W = x.shape
    k = taps.shape[0]
    pad = (k - 1) // 2
    avg = x.mean(axis=(2, 3))   # (N, C)
    mx = x.max(axis=(2, 3))     # (N, C)

    def conv1d(v):
        vp = jnp.pad(v, ((0, 0), (pad, pad)))
        return sum(taps[j] * vp[:, j:j + C] for j in range(k))

    gate = jax.nn.sigmoid(conv1d(avg) + conv1d(mx))
    return x * gate[:, :, None, None]


if __name__ == "__main__":
    # Small shapes consistent with the module (NCHW input).
    N, C, H, W = 2, 16, 16, 16
    b, gamma = 1, 2
    kernel_size = int(abs((math.log(C, 2) + b) / gamma))
    kernel_size = kernel_size if kernel_size % 2 else kernel_size + 1   # -> 3

    key = jax.random.PRNGKey(0)
    kx, kw = jax.random.split(key)
    x = jax.random.normal(kx, (N, C, H, W), dtype=jnp.float32)
    bound = 1.0 / math.sqrt(kernel_size)   # Conv1d default init range
    conv_taps = jax.random.uniform(kw, (kernel_size,), minval=-bound, maxval=bound,
                                   dtype=jnp.float32)

    # Eval mode: deterministic, check against the pure-JAX reference.
    out = jax.block_until_ready(drop_mlt_eca(x, conv_taps, p=0.1, training=False))
    ref = _reference(x, conv_taps)
    assert out.shape == (N, C, H, W)
    assert jnp.allclose(out, ref, atol=1e-5, rtol=1e-5), "eval-mode mismatch vs reference"

    # Training mode: exercises the dropout path (mask streamed into the kernel).
    out_tr = jax.block_until_ready(drop_mlt_eca(x, conv_taps, p=0.1, training=True, seed=123))
    assert out_tr.shape == (N, C, H, W)
    assert bool(jnp.all(jnp.isfinite(out_tr)))
    drop_frac = float(jnp.mean(out_tr == 0.0))
    assert 0.02 <= drop_frac <= 0.3, f"unexpected dropout fraction {drop_frac}"

    print("KERNEL_OK")
</pallas_src>

<mosaic_0001>
module attributes {stable_mosaic.version = 11 : i64} {
  func.func @kernel(%arg0: i32, %arg1: memref<3xf32, #tpu.memory_space<smem>>, %arg2: memref<1x16x256xf32, #tpu.memory_space<vmem>>, %arg3: memref<1x16x256xf32, #tpu.memory_space<vmem>>, %arg4: memref<1x32x1xf32, #tpu.memory_space<vmem>>) attributes {dimension_semantics = [#tpu.dimension_semantics<parallel>], iteration_bounds = array<i64: 2>, scalar_prefetch = 0 : i64, scratch_operands = 1 : i64, tpu.core_type = #tpu.core_type<tc>, window_params = [{transform_indices = @transform_0, window_bounds = array<i64: 3>}, {transform_indices = @transform_1, window_bounds = array<i64: 1, 16, 256>}, {transform_indices = @transform_2, window_bounds = array<i64: 1, 16, 256>}]} {
    %c0 = arith.constant 0 : index
    %c0_0 = arith.constant 0 : index
    %c0_1 = arith.constant 0 : index
    %0 = vector.load %arg2[%c0, %c0_0, %c0_1] : memref<1x16x256xf32, #tpu.memory_space<vmem>>, vector<1x16x256xf32>
    %cst = arith.constant dense<0.000000e+00> : vector<1x16xf32>
    %1 = vector.multi_reduction <add>, %0, %cst [2] : vector<1x16x256xf32> to vector<1x16xf32>
    %2 = vector.shape_cast %1 : vector<1x16xf32> to vector<1x16x1xf32>
    %cst_2 = arith.constant 3.906250e-03 : f32
    %3 = vector.broadcast %cst_2 : f32 to vector<1x16x1xf32>
    %4 = arith.mulf %2, %3 : vector<1x16x1xf32>
    %cst_3 = arith.constant dense<0xFF800000> : vector<1x16xf32>
    %5 = vector.multi_reduction <maximumf>, %0, %cst_3 [2] : vector<1x16x256xf32> to vector<1x16xf32>
    %6 = vector.shape_cast %5 : vector<1x16xf32> to vector<1x16x1xf32>
    %7 = arith.addf %4, %6 : vector<1x16x1xf32>
    %cst_4 = arith.constant 0.000000e+00 : f32
    %8 = vector.broadcast %cst_4 : f32 to vector<1x32x1xf32>
    %c0_5 = arith.constant 0 : index
    %c0_6 = arith.constant 0 : index
    %c0_7 = arith.constant 0 : index
    %9 = vector.load %arg4[%c0_5, %c0_6, %c0_7] : memref<1x32x1xf32, #tpu.memory_space<vmem>>, vector<1x32x1xf32>
    tpu.vector_store %arg4[%c0_5, %c0_6, %c0_7], %8 {strides = array<i32>} : memref<1x32x1xf32, #tpu.memory_space<vmem>>, vector<1x32x1xf32>,
    %c0_8 = arith.constant 0 : index
    %c8 = arith.constant 8 : index
    %c0_9 = arith.constant 0 : index
    %10 = vector.load %arg4[%c0_8, %c8, %c0_9] : memref<1x32x1xf32, #tpu.memory_space<vmem>>, vector<1x16x1xf32>
    tpu.vector_store %arg4[%c0_8, %c8, %c0_9], %7 {strides = array<i32>} : memref<1x32x1xf32, #tpu.memory_space<vmem>>, vector<1x16x1xf32>,
    %c0_10 = arith.constant 0 : index
    %11 = memref.load %arg1[%c0_10] : memref<3xf32, #tpu.memory_space<smem>>
    %c0_11 = arith.constant 0 : index
    %c7 = arith.constant 7 : index
    %c0_12 = arith.constant 0 : index
    %12 = vector.load %arg4[%c0_11, %c7, %c0_12] : memref<1x32x1xf32, #tpu.memory_space<vmem>>, vector<1x16x1xf32>
    %13 = vector.broadcast %11 : f32 to vector<1x16x1xf32>
    %14 = arith.mulf %13, %12 : vector<1x16x1xf32>
    %c1 = arith.constant 1 : index
    %15 = memref.load %arg1[%c1] : memref<3xf32, #tpu.memory_space<smem>>
    %c0_13 = arith.constant 0 : index
    %c8_14 = arith.constant 8 : index
    %c0_15 = arith.constant 0 : index
    %16 = vector.load %arg4[%c0_13, %c8_14, %c0_15] : memref<1x32x1xf32, #tpu.memory_space<vmem>>, vector<1x16x1xf32>
    %17 = vector.broadcast %15 : f32 to vector<1x16x1xf32>
    %18 = arith.mulf %17, %16 : vector<1x16x1xf32>
    %19 = arith.addf %14, %18 : vector<1x16x1xf32>
    %c2 = arith.constant 2 : index
    %20 = memref.load %arg1[%c2] : memref<3xf32, #tpu.memory_space<smem>>
    %c0_16 = arith.constant 0 : index
    %c9 = arith.constant 9 : index
    %c0_17 = arith.constant 0 : index
    %21 = vector.load %arg4[%c0_16, %c9, %c0_17] : memref<1x32x1xf32, #tpu.memory_space<vmem>>, vector<1x16x1xf32>
    %22 = vector.broadcast %20 : f32 to vector<1x16x1xf32>
    %23 = arith.mulf %22, %21 : vector<1x16x1xf32>
    %24 = arith.addf %19, %23 : vector<1x16x1xf32>
    %25 = arith.negf %24 : vector<1x16x1xf32>
    %26 = math.exp %25 : vector<1x16x1xf32>
    %cst_18 = arith.constant 1.000000e+00 : f32
    %27 = vector.broadcast %cst_18 : f32 to vector<1x16x1xf32>
    %28 = arith.addf %27, %26 : vector<1x16x1xf32>
    %29 = arith.divf %27, %28 : vector<1x16x1xf32>
    %30 = vector.broadcast %29 : vector<1x16x1xf32> to vector<1x16x256xf32>
    %31 = arith.mulf %0, %30 : vector<1x16x256xf32>
    %c0_19 = arith.constant 0 : index
    %c0_20 = arith.constant 0 : index
    %c0_21 = arith.constant 0 : index
    %32 = vector.load %arg3[%c0_19, %c0_20, %c0_21] : memref<1x16x256xf32, #tpu.memory_space<vmem>>, vector<1x16x256xf32>
    tpu.vector_store %arg3[%c0_19, %c0_20, %c0_21], %31 {strides = array<i32>} : memref<1x16x256xf32, #tpu.memory_space<vmem>>, vector<1x16x256xf32>,
    return
  }
  func.func @transform_0(%arg0: i32) -> i32 {
    %c0_i32 = arith.constant 0 : i32
    %c0_i32_0 = arith.constant 0 : i32
    return %c0_i32 : i32
  }
  func.func @transform_1(%arg0: i32) -> (i32, i32, i32) {
    %c0_i32 = arith.constant 0 : i32
    %c0_i32_0 = arith.constant 0 : i32
    %c0_i32_1 = arith.constant 0 : i32
    return %arg0, %c0_i32, %c0_i32_0 : i32, i32, i32
  }
  func.func @transform_2(%arg0: i32) -> (i32, i32, i32) {
    %c0_i32 = arith.constant 0 : i32
    %c0_i32_0 = arith.constant 0 : i32
    %c0_i32_1 = arith.constant 0 : i32
    return %arg0, %c0_i32, %c0_i32_0 : i32, i32, i32
  }
}

</mosaic_0001>

<bundles_post_ra>
// kernel: tpu_custom_call.1
= control target key start
LH: loop header
LB: loop body
LE: loop exit
PB: predicated region body
PF: predicated region fallthrough
CT: control target
= control target key end

     0   :  { %7 = vsyncpa [#allocation6], 0  ;;  %s790_s0 = inlined_call_operand.hbm [shape: f32[3], index: 0, kind: input, shape index: {}]   ;;  %s791_s1 = inlined_call_operand.hbm [shape: f32[2,16,256], index: 1, kind: input, shape index: {}]   ;;  %s792_s2 = inlined_call_operand.hbm [shape: f32[2,16,256], index: 2, kind: output, shape index: {}]  }
   0x1   :  { %8 = vsyncpa [#allocation4], 0 }
   0x2   :  { %10 = vsyncpa [#allocation4 + $0x1], 0 }
   0x3   :  { %11 = vsyncpa [#allocation5], 0 }
   0x4   :  { %13 = vsyncpa [#allocation5 + $0x1], 0  ;;  %s618_s9 = smov 0   ;;  %s620_s10 = smov 0  }
   0x5   :  { %s622_s11 = smov 0   ;;  %s624_s12 = smov 0  }
   0x6 LB: > { %s639_s13 = sadd.s32 4294967295, %s594_s12   ;;  %s384_s14 = sadd.s32 4294967294, %s594_s12   ;;  %s594_s12 = sphi %s624_s12, %s803_s12   ;;  %s590_s11 = sphi %s622_s11, %s802_s11   ;;  %s586_s10 = sphi %s620_s10, %s801_s10   ;;  %s582_s9 = sphi %s618_s9, %s800_s9  }
   0x7   : > { %s643_s15 = sadd.s32 1, %s594_s12   ;;  %s47_s16 = sadd.s32 1, %s590_s11 }
   0x8   : > { %s44_s17 = ssub.s32 %s594_s12, %s643_s15  ;;  %p54_p0 = scmp.ne.s32.totalorder %s590_s11, %s586_s10 }
   0x9   : > { %p45_p1 = scmp.eq.s32.totalorder %s44_s17, 0  ;;  %p55_p2 = scmp.eq.s32.totalorder %s594_s12, 0 }
   0xa   : > { %p60_p3 = scmp.ne.s32.totalorder %s586_s10, %s582_s9  ;;  %p61_p4 = scmp.eq.s32.totalorder %s639_s13, 0 }
   0xb   : > { %s655_s18 = scalar_select %p45_p1, %s590_s11, %s47_s16  }
   0xc   : > { %p657_p5 = por %p55_p2, %p54_p0  ;;  %p663_p6 = por %p61_p4, %p60_p3 }
   0xd   : > { %p84_p7 = scmp.eq.s32.totalorder %s639_s13, 1  ;;  %p90_p8 = scmp.eq.s32.totalorder %s384_s14, 1 }
   0xe   : > { %p385_p9 = scmp.ge.s32.totalorder %s594_s12, 1  ;;  %p97_p10 = scmp.lt.s32.totalorder %s594_s12, 3 }
   0xf   : > { %p670_p11 = por %p84_p7, %p54_p0  ;;  %p674_p12 = por %p90_p8, %p60_p3 }
  0x10   : > { %p678_p13 = pnand %p385_p9, %p97_p10  ;;  %s109_s26 = sshll.u32 %s790_s0, 4  ;;  %s110_s26 = int_to_ptr.hbm [resolvable:$true] %s109_s26 }
  0x11   : > { %p427_p2 = scmp.lt.s32.totalorder %s594_s12, 2  ;;  %s120_s27 = sand.u32 1, %s590_s11  }
  0x12   : > { %p414_p1 = pneg %p678_p13  ;;  %s388_s29 = sshll.u32 %s120_s27, 5 }
  0x13   : > { %p694_p3 = pnand %p427_p2, %p657_p5  ;;  %s596_s30 = smov [#allocation3]  }
  0x14   : > { %p415_p7 = pnand %p414_p1, %p61_p4  ;;  %s404_s3 = sshll.u32 %s594_s12, 5 }
  0x15   : > { %s124_s4 = scalar_lea.vmem [#allocation7], %s388_s29  ;;  %s129_s8 = scalar_lea.hbm %s791_s1, %s404_s3 }
  0x16   : > { %417 = dma.hbm_to_smem (!%p415_p7), %s110_s26, 16, %s596_s30, [#allocation6]  }
  0x17   : > { %s132_s5 = sshll.u32 %s124_s4, 4  ;;  %s130_s14 = sshll.u32 %s129_s8, 4  ;;  %s133_s5 = int_to_ptr.vmem [resolvable:$true] %s132_s5  ;;  %s131_s14 = int_to_ptr.hbm [resolvable:$true] %s130_s14 }
  0x18   : > { %s121_s16 = scalar_lea.sflag [#allocation4], %s120_s27  ;;  %s494_s17 = sshra.s32 %s131_s14, 4  ;;  %s495_s17 = int_to_ptr.hbm [resolvable:$true] %s494_s17 }
  0x19   : > { %s496_s19 = scalar_lea.hbm %s495_s17, 32  ;;  %p498_p8 = pneg %p694_p3 }
  0x1a   : > { %p497_p5 = scmp.ne.s32.totalorder %s495_s17, %s496_s19  ;;  %s501_s26 = scalar_lea.hbm %s791_s1, 64 }
  0x1b   : > { %p502_p1 = scmp.lt.s32.totalorder %s495_s17, %s791_s1  ;;  %p503_p2 = scmp.lt.s32.totalorder %s501_s26, %s496_s19 }
  0x1c   : > { %p499_p9 = pnand %p498_p8, %p497_p5 }
  0x1d   : > { %p504_p7 = por %p503_p2, %p502_p1 }
  0x1e   : > { %p500_p10 = pneg %p499_p9 }
  0x20   : > { %p505_p0 = pnand %p504_p7, %p500_p10 }
  0x22   : > { %508 = shalt.err (!%p505_p0)
}
  0x23   : > { %s597_s27 = smov 256   ;;  %s598_s3 = smov 16  }
  0x24   : > { %421 = dma.hbm_to_vmem [thread:$0]  (!%p694_p3), %s131_s14, 512, %s133_s5, %s121_s16, %s597_s27, %s597_s27, %s598_s3  }
  0x25   : > { %144 = sbr.rel (%p678_p13) target bundleno = 326 (0x146), region = 28 }
  0x2a   : > { %569 = dma.done.wait (%p61_p4), [#allocation6], 16  }
  0x2b   : > { %571 = vsyncadd (%p61_p4), [#allocation6], 4294967280  ;;  %s719_s4 = sand.u32 1, %s586_s10  }
  0x2c   : > { %s393_s6 = sshll.u32 %s719_s4, 5  ;;  %s152_s7 = scalar_lea.sflag [#allocation4], %s719_s4 }
  0x2d   : > { %s155_s28 = scalar_lea.vmem [#allocation7], %s393_s6 }
  0x2e   : > { %573 = dma.done.wait (%p663_p6), %s152_s7, 512  }
  0x2f   : > { %575 = vsyncadd (%p663_p6), %s152_s7, 4294966784 }
  0x30   : > { %161 = sfence }
  0x31   : > { %v729_v0 = vld [vmem:[%s155_s28] sm:$0xff]  ;;  %v731_v1 = vld [vmem:[%s155_s28 + $0x8] sm:$0xff]  ;;  %v737_v4 = vld [vmem:[%s155_s28 + $0x10] sm:$0xff]  ;;  %vm198_vm0 = vcmask 7168   ;;  %v599_v8 = vmov 0.0   ;;  %v600_v9 = vmov 0  }
  0x32   : > { %v182_v2 = vadd.f32 %v731_v1, %v729_v0  ;;  %v190_v3 = vmax.f32 %v729_v0, %v731_v1  ;;  %v739_v5 = vld [vmem:[%s155_s28 + $0x18] sm:$0xff]  ;;  %199 = vst.msk [vmem:[#allocation2] sm:$0xff] %vm198_vm0, %v599_v8  ;;  %469 = vset.pattern.permute.xlu2 %v600_v9  ;;  %470 = vset.pattern.permute.xlu0 %v600_v9  ;;  %s205_s20 = sld [smem:[#allocation3]]  ;;  %s405_s8 = sshll.u32 %s639_s13, 5 }
  0x33   : > { %v185_v6 = vadd.f32 %v739_v5, %v737_v4  ;;  %v193_v7 = vmax.f32 %v737_v4, %v739_v5  ;;  %200 = vst.msk [vmem:[#allocation2 + $0x8] sm:$0xff] %vm198_vm0, %v599_v8  ;;  %s395_s23 = sld [smem:[#allocation3 + $0x1]]  ;;  %s177_s14 = scalar_lea.vmem [#allocation8], %s393_s6 }
  0x34   : > { %183 = vadd.xlane.f32.xlu0 %v182_v2  ;;  %191 = vmax.xlane.f32.xlu1 %v190_v3  ;;  %202 = vst.msk [vmem:[#allocation2 + $0x18] sm:$0xff] %vm198_vm0, %v599_v8  ;;  %s396_s5 = sld [smem:[#allocation3 + $0x2]]  ;;  %s295_s19 = scalar_lea.hbm %s792_s2, %s405_s8 }
  0x35   : > { %201 = vst.msk [vmem:[#allocation2 + $0x10] sm:$0xff] %vm198_vm0, %v599_v8  ;;  %s296_s24 = sshll.u32 %s177_s14, 4  ;;  %s298_s25 = sshll.u32 %s295_s19, 4  ;;  %s297_s24 = int_to_ptr.vmem [resolvable:$true] %s296_s24  ;;  %s299_s25 = int_to_ptr.hbm [resolvable:$true] %s298_s25 }
  0x36   : > { %s284_s13 = scalar_lea.sflag [#allocation5], %s719_s4  ;;  %s538_s26 = sshra.s32 %s299_s25, 4  ;;  %s539_s26 = int_to_ptr.hbm [resolvable:$true] %s538_s26 }
  0x37   : > { %s540_s29 = scalar_lea.hbm %s539_s26, 32  ;;  %s544_s3 = scalar_lea.hbm %s792_s2, 64 }
  0x38   : > { %v208_v19 = vstv %s205_s20  ;;  %p541_p4 = scmp.ne.s32.totalorder %s539_s26, %s540_s29  ;;  %p545_p0 = scmp.lt.s32.totalorder %s539_s26, %s792_s2 }
  0x39   : > { %v214_v21 = vstv %s395_s23  ;;  %p546_p3 = scmp.lt.s32.totalorder %s544_s3, %s540_s29 }
  0x3a   : > { %v222_v24 = vstv %s396_s5  ;;  %p542_p6 = pnand %p541_p4, %p670_p11 }
  0x3b   : > { %p547_p5 = por %p546_p3, %p545_p0 }
  0x3c   : > { %186 = vadd.xlane.f32.xlu0 %v185_v6  ;;  %194 = vmax.xlane.f32.xlu1 %v193_v7  ;;  %p543_p13 = pneg %p542_p6 }
  0x3e   : > { %p548_p8 = pnand %p547_p5, %p543_p13 }
  0xa7   : > { %v184_v10 = vpop.xlane.xlu0 %183  ;;  %v192_v11 = vpop.xlane.xlu1 %191 }
  0xa8   : > { %v188_v12 = vmul.f32 0.00390625, %v184_v10 }
  0xaa   : > { %v196_v13 = vadd.f32 %v192_v11, %v188_v12 }
  0xac   : > { %203 = vst.msk [vmem:[#allocation2 + $0x8] sm:$0xff] %vm198_vm0, %v196_v13 }
  0xaf   : > { %v187_v14 = vpop.xlane.xlu0 %186  ;;  %v195_v15 = vpop.xlane.xlu1 %194 }
  0xb0   : > { %v189_v16 = vmul.f32 0.00390625, %v187_v14 }
  0xb2   : > { %v197_v17 = vadd.f32 %v195_v15, %v189_v16 }
  0xb3   : > { %v206_v18 = vld [vmem:[#allocation2 + $0x7] sm:$0xff] }
  0xb4   : > { %204 = vst.msk [vmem:[#allocation2 + $0x10] sm:$0xff] %vm198_vm0, %v197_v17  ;;  %v212_v20 = vld [vmem:[#allocation2 + $0x8] sm:$0xff]  ;;  %v209_v22 = vmul.f32 %v208_v19, %v206_v18 }
  0xb5   : > { %v215_v23 = vmul.f32 %v214_v21, %v212_v20 }
  0xb7   : > { %v217_v28 = vadd.f32 %v215_v23, %v209_v22 }
  0xbb   : > { %v220_v25 = vld [vmem:[#allocation2 + $0x9] sm:$0xff]  ;;  %v221_v32 = vld [vmem:[#allocation2 + $0x11] sm:$0xff] }
  0xbc   : > { %v207_v26 = vld [vmem:[#allocation2 + $0xf] sm:$0xff]  ;;  %v223_v29 = vmul.f32 %v222_v24, %v220_v25  ;;  %v224_v35 = vmul.f32 %v222_v24, %v221_v32 }
  0xbd   : > { %v213_v27 = vld [vmem:[#allocation2 + $0x10] sm:$0xff]  ;;  %v210_v30 = vmul.f32 %v208_v19, %v207_v26 }
  0xbe   : > { %v216_v31 = vmul.f32 %v214_v21, %v213_v27  ;;  %v225_v33 = vadd.f32 %v223_v29, %v217_v28 }
  0xc0   : > { %v218_v34 = vadd.f32 %v216_v31, %v210_v30  ;;  %v397_v36 = vmul.f32 -1.442695, %v225_v33 }
  0xc2   : > { %v226_v37 = vadd.f32 %v224_v35, %v218_v34  ;;  %471 = vpow2.f32 %v397_v36 }
  0xc4   : > { %v398_v38 = vmul.f32 -1.442695, %v226_v37 }
  0xc6   : > { %473 = vpow2.f32 %v398_v38 }
  0xc8   : > { %v472_v39 = vpop.eup %471 }
  0xc9   : > { %v233_v40 = vadd.f32 1.0, %v472_v39 }
  0xcb   : > { %475 = vrcp.f32 %v233_v40  ;;  %v246_v47 = vand.u32 2147483648, %v233_v40  ;;  %v244_v50 = vand.u32 2147483647, %v233_v40  ;;  %vm240_vm2 = vweird.f32 %v233_v40 }
  0xcc   : > { %v474_v41 = vpop.eup %473 }
  0xcd   : > { %v234_v42 = vadd.f32 1.0, %v474_v41  ;;  %v247_v53 = vor.u32 1.1754944e-38, %v246_v47  ;;  %vm245_vm4 = vcmp.eq.f32.partialorder %v244_v50, 8.507059e+37 }
  0xcf   : > { %477 = vrcp.f32 %v234_v42  ;;  %v261_v58 = vand.u32 2147483648, %v234_v42  ;;  %vm255_vm6 = vweird.f32 %v234_v42  ;;  %v259_v59 = vand.u32 2147483647, %v234_v42 }
  0xd1   : > { %v476_v43 = vpop.eup %475  ;;  %v262_v61 = vor.u32 1.1754944e-38, %v261_v58  ;;  %vm260_vm8 = vcmp.eq.f32.partialorder %v259_v59, 8.507059e+37 }
  0xd2   : > { %v236_v44 = vmul.f32 %v476_v43, %v233_v40  ;;  %vm241_vm1 = vweird.f32 %v476_v43 }
  0xd3   : > { %vm242_vm3 = vmor %vm240_vm2, %vm241_vm1 }
  0xd4   : > { %v237_v46 = vsub.f32 1.0, %v236_v44 }
  0xd5   : > { %v478_v45 = vpop.eup %477 }
  0xd6   : > { %v251_v48 = vmul.f32 %v478_v45, %v234_v42  ;;  %v238_v49 = vmul.f32 %v476_v43, %v237_v46  ;;  %vm256_vm5 = vweird.f32 %v478_v45 }
  0xd7   : > { %vm257_vm7 = vmor %vm255_vm6, %vm256_vm5 }
  0xd8   : > { %v252_v51 = vsub.f32 1.0, %v251_v48  ;;  %v239_v52 = vadd.f32 %v476_v43, %v238_v49 }
  0xda   : > { %v253_v54 = vmul.f32 %v478_v45, %v252_v51  ;;  %v243_v55 = vsel %vm242_vm3, %v476_v43, %v239_v52 }
  0xdb   : > { %v248_v56 = vsel %vm245_vm4, %v247_v53, %v243_v55 }
  0xdc   : > { %267 = vperm.xlu2 %469, %v248_v56   ;;  %v254_v57 = vadd.f32 %v478_v45, %v253_v54 }
  0xde   : > { %v258_v60 = vsel %vm257_vm7, %v478_v45, %v254_v57 }
  0xdf   : > { %v263_v62 = vsel %vm260_vm8, %v262_v61, %v258_v60 }
  0xe4   : > { %272 = vperm.xlu2 %469, %v263_v62  }
 0x136   : > { %v268_v63 = vpop.permute.xlu2 %267 }
 0x137   : > { %v275_v2 = vmul.f32 %v268_v63, %v729_v0  ;;  %v276_v3 = vmul.f32 %v268_v63, %v731_v1 }
 0x139   : > { %279 = vst [vmem:[%s177_s14] sm:$0xff] %v275_v2 }
 0x13a   : > { %280 = vst [vmem:[%s177_s14 + $0x8] sm:$0xff] %v276_v3 }
 0x13e   : > { %v273_v6 = vpop.permute.xlu2 %272 }
 0x13f   : > { %v277_v7 = vmul.f32 %v273_v6, %v737_v4  ;;  %v278_v8 = vmul.f32 %v273_v6, %v739_v5 }
 0x141   : > { %281 = vst [vmem:[%s177_s14 + $0x10] sm:$0xff] %v277_v7 }
 0x142   : > { %282 = vst [vmem:[%s177_s14 + $0x18] sm:$0xff] %v278_v8 }
 0x143   : > { %551 = shalt.err (!%p548_p8)
}
 0x144   : > { %s601_s4 = smov 256   ;;  %s602_s28 = smov 16  }
 0x145   : > { %412 = dma.vmem_to_hbm [thread:$0]  (%p670_p11), %s297_s24, 512, %s299_s25, %s284_s13, %s601_s4, %s601_s4, %s602_s28  }
 0x146 PF: > { %s313_s20 = sand.u32 1, %s582_s9   ;;  %p799_p9 = scmp.ge.s32.totalorder %s594_s12, 2 }
 0x147   : > { %s314_s23 = scalar_lea.sflag [#allocation5], %s313_s20 }
 0x148   : > { %p423_p10 = pnand %p799_p9, %p674_p12 }
 0x14a   : > { %p424_p1 = pneg %p423_p10 }
 0x14c   : > { %577 = dma.done.wait (%p424_p1), %s314_s23, 512  }
 0x14d   : > { %579 = vsyncadd (%p424_p1), %s314_s23, 4294966784  ;;  %p16_p2 = scmp.ge.s32.totalorder %s643_s15, 4   ;;  %s800_s9 = smov %s586_s10 }
 0x14e   : > { %s801_s10 = smov %s590_s11  ;;  %s802_s11 = smov %s655_s18 }
 0x14f   : > { %s803_s12 = smov %s643_s15  ;;  %18 = sbr.rel (!%p16_p2) target bundleno = 6 (0x6), region = 78 }
 0x154   :  { %320 = vsyncpa [#allocation4], 1 }
 0x155   :  { %322 = vsyncpa [#allocation4 + $0x1], 1 }
 0x156   :  { %323 = vsyncpa [#allocation5], 1 }
 0x157   :  { %325 = vsyncpa [#allocation5 + $0x1], 1 }
 0x158   :  { %326 = vsyncpa [#allocation6], 1 }
 0x159   :  { %328 = vsyncpa [#allocation6 + $0x1], 1 }

</bundles_post_ra>
